<compile_context>
chip_gen: v6e
topology: v6e:2x2x1
jax: 0.10.0
libtpu: 0.0.40
codegen_flags: <defaults>
</compile_context>

<pallas_src>
import math
from functools import partial

import jax
import jax.numpy as jnp
from jax import lax
from jax.experimental import pallas as pl
from jax.experimental.pallas import tpu as pltpu

_LANE_CANDIDATES = (2048, 1024, 512, 256, 128)
_QUANT_BLOCK_BYTES = 4 * 1024 * 1024   # in+out double-buffered ~16 MiB + temps
_CAL_BLOCK_BYTES = 8 * 1024 * 1024     # read-only, ~16 MiB double-buffered
_VMEM_LIMIT_BYTES = 48 * 1024 * 1024   # buffers + elementwise temps, < v7x 64 MiB
_MIN_GRID_STEPS = 4                    # keep both v7x TensorCores busy


# ----------------------------------------------------------------------------
# Slab / tiling planning (host-side, static)
# ----------------------------------------------------------------------------
def _sublanes(dtype):
    # dtype-native sublane packing: f32 -> 8, bf16 -> 16, int8/fp8 -> 32
    return {4: 8, 2: 16, 1: 32}.get(jnp.dtype(dtype).itemsize, 8)


def _choose_width(n, sub):
    """Lane width of the (rows, W) slab. exact=True: the whole flat tensor
    reshapes copy-free (numel divides W*SUB)."""
    for w in _LANE_CANDIDATES:
        if n % (w * sub) == 0:
            return w, True
    for w in _LANE_CANDIDATES:
        if n >= w * sub:
            return w, False
    return _LANE_CANDIDATES[-1], False


def _pick_tile(rows, w, itemsize, sub, target_bytes):
    """Rows per block: close to target_bytes, a multiple of the dtype sublane
    count, capped so the grid keeps >=_MIN_GRID_STEPS steps, and preferably an
    exact divisor of `rows` so no block is ever partial."""
    g = rows // sub                                     # sublane groups
    tg = max(1, target_bytes // (itemsize * w * sub))   # target groups / block
    if g >= _MIN_GRID_STEPS:
        tg = min(tg, max(1, g // _MIN_GRID_STEPS))
    tg = min(tg, g)
    for d in range(tg, max(1, tg // 2) - 1, -1):        # prefer exact divisor
        if g % d == 0:
            return d * sub
    return tg * sub


# ----------------------------------------------------------------------------
# Shared math (kernel body and XLA tail use the same code path)
# ----------------------------------------------------------------------------
def _quant_math_f32(x, bits, a_in=None, a_out=None):
    """log_linear_quantize math on an f32 array (transcribed from the PyTorch
    reference: linear_quantize(log|x|+1e-20, sf, bits-1) -> exp -> *sign)."""
    if bits == 1:
        return jnp.sign(x)
    s = jnp.sign(x)
    if bits == 2:
        # linear_quantize(., sf, 1) == sign(.) - 1   (independent of sf)
        y = jnp.log(jnp.abs(x) + 1e-20)
        return jnp.exp(jnp.sign(y) - 1.0) * s
    # bits > 2: a_in = 2^(bits-2)/2^sf, a_out = 2^sf/2^(bits-2)
    min_val = -(2.0 ** (bits - 2))
    max_val = (2.0 ** (bits - 2)) - 1.0
    y = jnp.log(jnp.abs(x) + 1e-20)
    q = jnp.clip(jnp.round(y * a_in), min_val, max_val)
    return jnp.exp(q * a_out) * s


def _xla_log_abs_max(v):
    return jnp.max(jnp.abs(jnp.log(jnp.abs(v.astype(jnp.float32)))))


# ----------------------------------------------------------------------------
# Kernels
# ----------------------------------------------------------------------------
def _make_quant_kernel(bits, with_scales):
    if with_scales:
        def kernel(scale_ref, x_ref, o_ref):
            x = x_ref[...].astype(jnp.float32)
            o_ref[...] = _quant_math_f32(
                x, bits, scale_ref[0], scale_ref[1]).astype(o_ref.dtype)
    else:
        def kernel(x_ref, o_ref):
            x = x_ref[...].astype(jnp.float32)
            o_ref[...] = _quant_math_f32(x, bits).astype(o_ref.dtype)
    return kernel


def _make_calib_kernel(tile_r, w):
    """Per-shard running max of |log(|x|)| into an (8, w) output-resident
    accumulator (pure VPU maxes per step; no per-step XLU reduce)."""
    groups = tile_r // 8

    def kernel(x_ref, o_ref):
        r = pl.program_id(1)

        @pl.when(r == 0)
        def _init():
            o_ref[...] = jnp.zeros_like(o_ref)     # |log|x|| >= 0, 0 is neutral

        v = jnp.abs(jnp.log(jnp.abs(x_ref[...].astype(jnp.float32))))
        if groups > 1:
            v = v.reshape(groups, 8, w).max(axis=0)
        o_ref[...] = jnp.maximum(o_ref[...], v)

    return kernel


# ----------------------------------------------------------------------------
# Traced runners (called under jit)
# ----------------------------------------------------------------------------
def _run_log_quant(x, bits, scales):
    flat = x.reshape(-1)
    n = flat.shape[0]
    sub = _sublanes(x.dtype)
    w, exact = _choose_width(n, sub)

    def xla_math(v):
        if scales is None:
            return _quant_math_f32(v.astype(jnp.float32), bits).astype(x.dtype)
        return _quant_math_f32(v.astype(jnp.float32), bits,
                               scales[0], scales[1]).astype(x.dtype)

    if not exact and n < w * sub:
        # TODO(synk): tensors smaller than one (SUB x 128) tile fall back to XLA.
        return xla_math(flat).reshape(x.shape)

    n_main = n if exact else (n // (w * sub)) * (w * sub)
    rows = n_main // w
    slab = (flat if exact else flat[:n_main]).reshape(rows, w)
    tile_r = _pick_tile(rows, w, x.dtype.itemsize, sub, _QUANT_BLOCK_BYTES)
    nblk = rows // tile_r
    covered = nblk * tile_r                  # full blocks only: never a partial DMA

    kernel = _make_quant_kernel(bits, scales is not None)
    in_specs = [pl.BlockSpec((tile_r, w), lambda i: (i, 0))]
    args = (slab,)
    if scales is not None:
        in_specs = [pl.BlockSpec(memory_space=pltpu.MemorySpace.SMEM)] + in_specs
        args = (scales, slab)

    out = pl.pallas_call(
        kernel,
        out_shape=jax.ShapeDtypeStruct((covered, w), x.dtype),
        grid=(nblk,),
        in_specs=in_specs,
        out_specs=pl.BlockSpec((tile_r, w), lambda i: (i, 0)),
        compiler_params=pltpu.CompilerParams(
            dimension_semantics=("parallel",),
            vmem_limit_bytes=_VMEM_LIMIT_BYTES),
    )(*args)

    if covered * w == n:
        return out.reshape(x.shape)
    # TODO(synk): the ragged remainder still costs one XLA concat pass; a
    # tail-only pallas_call aliased into a pre-sized buffer would avoid it.
    rest = xla_math(flat[covered * w:])
    return jnp.concatenate([out.reshape(-1), rest]).reshape(x.shape)


def _run_log_abs_max(x):
    """max(|log(|x|)|): LogQuant calibration statistic for overflow_rate == 0."""
    flat = x.reshape(-1)
    n = flat.shape[0]
    sub = _sublanes(x.dtype)
    w, exact = _choose_width(n, sub)

    if not exact and n < w * sub:
        # TODO(synk): tensors smaller than one (SUB x 128) tile fall back to XLA.
        return _xla_log_abs_max(flat)

    n_main = n if exact else (n // (w * sub)) * (w * sub)
    rows = n_main // w
    slab = (flat if exact else flat[:n_main]).reshape(rows, w)
    tile_r = _pick_tile(rows, w, x.dtype.itemsize, sub, _CAL_BLOCK_BYTES)
    nblk = rows // tile_r
    n_par = 2 if nblk >= 2 else 1            # shard across v7x's 2 TensorCores
    bps = nblk // n_par
    covered = n_par * bps * tile_r

    partials = pl.pallas_call(
        _make_calib_kernel(tile_r, w),
        out_shape=jax.ShapeDtypeStruct((n_par, 8, w), jnp.float32),
        grid=(n_par, bps),
        in_specs=[pl.BlockSpec((tile_r, w), lambda p, r: (p * bps + r, 0))],
        out_specs=pl.BlockSpec((None, 8, w), lambda p, r: (p, 0, 0)),
        compiler_params=pltpu.CompilerParams(
            dimension_semantics=("parallel", "arbitrary"),
            vmem_limit_bytes=_VMEM_LIMIT_BYTES),
    )(slab)

    v = jnp.max(partials)
    if covered * w < n:                      # leftover rows + ragged flat tail
        v = jnp.maximum(v, _xla_log_abs_max(flat[covered * w:]))
    return v


# ----------------------------------------------------------------------------
# Jitted entry points
# ----------------------------------------------------------------------------
@partial(jax.jit, static_argnames=("bits",))
def _log_quant_with_sf(x, sf, bits):
    # sf stays a device scalar; scales reach the kernel through SMEM, so there
    # is no host sync and no recompile per sf value.
    sf_f = jnp.asarray(sf).astype(jnp.float32)
    a_in = jnp.exp2(jnp.float32(bits - 2) - sf_f)    # 2^(bits-2)/2^sf
    a_out = jnp.exp2(sf_f - jnp.float32(bits - 2))   # 2^sf/2^(bits-2)
    scales = jnp.stack([a_in, a_out]).astype(jnp.float32)
    return _run_log_quant(x, bits, scales)


@partial(jax.jit, static_argnames=("bits",))
def _log_quant_no_sf(x, bits):
    return _run_log_quant(x, bits, None)


@partial(jax.jit, static_argnames=("bits", "overflow_rate"))
def _log_quant_calibrate(x, bits, overflow_rate):
    n = math.prod(x.shape)
    split_idx = int(overflow_rate * n)
    if split_idx == 0:
        v = _run_log_abs_max(x)
    else:
        # TODO(synk): the overflow-quantile needs a global top-k; no clean
        # single-kernel Pallas equivalent, so XLA top_k (cheaper than full sort).
        stat = jnp.abs(jnp.log(jnp.abs(x.astype(jnp.float32)))).reshape(-1)
        v = lax.top_k(stat, split_idx + 1)[0][split_idx]
    sf_integral = jnp.ceil(jnp.log2(v + 1e-12))
    return jnp.int32(bits - 1) - sf_integral.astype(jnp.int32)


def pallas_log_linear_quantize(x, sf, bits):
    assert bits >= 1, bits
    if bits == 1:
        return (_log_quant_no_sf(x, bits=1), 0.0, 0.0)
    if bits == 2:
        return _log_quant_no_sf(x, bits=2)
    assert sf is not None, "LogQuant.sf must be set (run calibration first)"
    return _log_quant_with_sf(x, sf, bits=bits)


def pallas_log_quant_calibrate(x, bits, overflow_rate=0.0):
    return _log_quant_calibrate(x, bits=bits, overflow_rate=float(overflow_rate))


# ----------------------------------------------------------------------------
# Module mirror (stateful calibration counter, like the PyTorch nn.Module)
# ----------------------------------------------------------------------------
class LogQuant:
    def __init__(self, name, bits, sf=None, overflow_rate=0.0, counter=10):
        self.name = name
        self._counter = counter
        self.bits = bits
        self.sf = sf
        self.overflow_rate = overflow_rate

    @property
    def counter(self):
        return self._counter

    def __call__(self, x):
        if self._counter > 0:
            self._counter -= 1
            sf_new = pallas_log_quant_calibrate(x, self.bits, self.overflow_rate)
            if self.sf is None:
                self.sf = sf_new                       # stays on device
            else:
                self.sf = jnp.minimum(jnp.asarray(self.sf, jnp.int32), sf_new)
            return x
        return pallas_log_linear_quantize(x, self.sf, self.bits)

    forward = __call__

    def __repr__(self):
        return '{}(sf={}, bits={}, overflow_rate={:.3f}, counter={})'.format(
            self.__class__.__name__, self.sf, self.bits, self.overflow_rate,
            self.counter)


# ----------------------------------------------------------------------------
# Self-test
# ----------------------------------------------------------------------------
def _ref_log_linear_quantize(x, sf, bits):
    """Direct transcription of the PyTorch log_linear_quantize/linear_quantize."""
    s = jnp.sign(x)
    y = jnp.log(jnp.abs(x) + 1e-20)
    bq = bits - 1
    bound = 2.0 ** (bq - 1)
    codes = jnp.clip(jnp.round(y * (2.0 ** (bq - 1) / 2.0 ** sf)),
                     -bound, bound - 1.0)
    return jnp.exp(codes * (2.0 ** sf / 2.0 ** (bq - 1))) * s


if __name__ == "__main__":
    key = jax.random.PRNGKey(0)
    x = jax.random.normal(key, (2, 4, 16, 16), dtype=jnp.float32) * 3.0

    m = LogQuant("logq", bits=8, sf=None, overflow_rate=0.0, counter=1)

    # First call: calibration branch -> sharded |log|x|| max-reduction kernel.
    y_calib = m(x)
    jax.block_until_ready(y_calib)
    jax.block_until_ready(m.sf)
    assert y_calib.shape == x.shape

    # Second call: counter == 0 -> log-quantize branch (elementwise kernel,
    # sf handed to the kernel as an SMEM scale pair).
    y_quant = m(x)
    jax.block_until_ready(y_quant)
    assert y_quant.shape == x.shape and y_quant.dtype == x.dtype

    # --- references transcribed from the PyTorch spec -------------------------
    v_ref = float(jnp.max(jnp.abs(jnp.log(jnp.abs(x)))))
    sf_ref = m.bits - 1 - math.ceil(math.log2(v_ref + 1e-12))
    assert int(m.sf) == sf_ref, (int(m.sf), sf_ref)

    ref = _ref_log_linear_quantize(x, sf_ref, m.bits)
    assert bool(jnp.all(jnp.sign(y_quant) == jnp.sign(ref)))
    rel = jnp.abs(y_quant - ref) / (jnp.abs(ref) + 1e-12)
    n_bad = int(jnp.sum(rel > 1e-4))
    assert n_bad <= 8, f"{n_bad} mismatches vs reference"
    assert float(jnp.max(rel)) < 0.3   # at worst one quantization code apart

    # Ragged shape: exercises the aligned-prefix + XLA-tail path (no pad copy).
    x2 = jax.random.normal(jax.random.PRNGKey(1), (1, 3, 20, 20),
                           dtype=jnp.float32) + 2.0
    m2 = LogQuant("logq2", bits=6, sf=3, overflow_rate=0.0, counter=0)
    y2 = m2(x2)
    jax.block_until_ready(y2)
    assert y2.shape == x2.shape and y2.dtype == x2.dtype
    ref2 = _ref_log_linear_quantize(x2, 3, 6)
    rel2 = jnp.abs(y2 - ref2) / (jnp.abs(ref2) + 1e-12)
    assert int(jnp.sum(rel2 > 1e-3)) <= 8

    print("KERNEL_OK")
</pallas_src>

<mosaic_0001>
module attributes {stable_mosaic.version = 11 : i64} {
  func.func @kernel(%arg0: i32, %arg1: i32, %arg2: memref<8x256xf32, #tpu.memory_space<vmem>>, %arg3: memref<1x8x256xf32, #tpu.memory_space<vmem>>) attributes {dimension_semantics = [#tpu.dimension_semantics<parallel>, #tpu.dimension_semantics<arbitrary>], iteration_bounds = array<i64: 1, 1>, scalar_prefetch = 0 : i64, scratch_operands = 0 : i64, tpu.core_type = #tpu.core_type<tc>, window_params = [{transform_indices = @transform_0, window_bounds = array<i64: 8, 256>}, {transform_indices = @transform_1, window_bounds = array<i64: 1, 8, 256>}]} {
    %c0_i32 = arith.constant 0 : i32
    %0 = arith.cmpi eq, %arg1, %c0_i32 : i32
    %1 = arith.extui %0 : i1 to i32
    %c0_i32_0 = arith.constant 0 : i32
    %2 = arith.cmpi ne, %1, %c0_i32_0 : i32
    scf.if %2 {
      %cst = arith.constant 0.000000e+00 : f32
      %13 = vector.broadcast %cst : f32 to vector<8x256xf32>
      %c0_8 = arith.constant 0 : index
      %c0_9 = arith.constant 0 : index
      %c0_10 = arith.constant 0 : index
      %14 = vector.load %arg3[%c0_8, %c0_9, %c0_10] : memref<1x8x256xf32, #tpu.memory_space<vmem>>, vector<1x8x256xf32>
      %15 = vector.shape_cast %14 : vector<1x8x256xf32> to vector<8x256xf32>
      %16 = vector.shape_cast %13 : vector<8x256xf32> to vector<1x8x256xf32>
      tpu.vector_store %arg3[%c0_8, %c0_9, %c0_10], %16 {strides = array<i32>} : memref<1x8x256xf32, #tpu.memory_space<vmem>>, vector<1x8x256xf32>,
    } else {
    }
    %c0 = arith.constant 0 : index
    %c0_1 = arith.constant 0 : index
    %3 = vector.load %arg2[%c0, %c0_1] : memref<8x256xf32, #tpu.memory_space<vmem>>, vector<8x256xf32>
    %4 = math.absf %3 : vector<8x256xf32>
    %5 = math.log %4 : vector<8x256xf32>
    %6 = math.absf %5 : vector<8x256xf32>
    %c0_2 = arith.constant 0 : index
    %c0_3 = arith.constant 0 : index
    %c0_4 = arith.constant 0 : index
    %7 = vector.load %arg3[%c0_2, %c0_3, %c0_4] : memref<1x8x256xf32, #tpu.memory_space<vmem>>, vector<1x8x256xf32>
    %8 = vector.shape_cast %7 : vector<1x8x256xf32> to vector<8x256xf32>
    %9 = arith.maximumf %8, %6 : vector<8x256xf32>
    %c0_5 = arith.constant 0 : index
    %c0_6 = arith.constant 0 : index
    %c0_7 = arith.constant 0 : index
    %10 = vector.load %arg3[%c0_5, %c0_6, %c0_7] : memref<1x8x256xf32, #tpu.memory_space<vmem>>, vector<1x8x256xf32>
    %11 = vector.shape_cast %10 : vector<1x8x256xf32> to vector<8x256xf32>
    %12 = vector.shape_cast %9 : vector<8x256xf32> to vector<1x8x256xf32>
    tpu.vector_store %arg3[%c0_5, %c0_6, %c0_7], %12 {strides = array<i32>} : memref<1x8x256xf32, #tpu.memory_space<vmem>>, vector<1x8x256xf32>,
    return
  }
  func.func @transform_0(%arg0: i32, %arg1: i32) -> (i32, i32) {
    %c1_i32 = arith.constant 1 : i32
    %0 = arith.muli %arg0, %c1_i32 : i32
    %1 = arith.addi %0, %arg1 : i32
    %c0_i32 = arith.constant 0 : i32
    %c0_i32_0 = arith.constant 0 : i32
    return %1, %c0_i32 : i32, i32
  }
  func.func @transform_1(%arg0: i32, %arg1: i32) -> (i32, i32, i32) {
    %c0_i32 = arith.constant 0 : i32
    %c0_i32_0 = arith.constant 0 : i32
    %c0_i32_1 = arith.constant 0 : i32
    return %arg0, %c0_i32, %c0_i32_0 : i32, i32, i32
  }
}

</mosaic_0001>

<bundles_post_ra>
// kernel: _log_quant_calibrate.1
= control target key start
LH: loop header
LB: loop body
LE: loop exit
PB: predicated region body
PF: predicated region fallthrough
CT: control target
= control target key end

     0   :  { %s87_s0 = inlined_call_operand.vmem [shape: f32[8,256], index: 0, kind: input, shape index: {}]   ;;  %s88_s1 = inlined_call_operand.vmem [shape: f32[1,8,256], index: 1, kind: output, shape index: {}]  }
   0x1   :  { %v34_v0 = vld [vmem:[%s87_s0] sm:$0xff]  ;;  %v35_v1 = vld [vmem:[%s87_s0 + $0x8] sm:$0xff] }
   0x2   :  { %v36_v2 = vand.u32 2147483647, %v34_v0  ;;  %v37_v3 = vand.u32 2147483647, %v35_v1 }
   0x4   :  { %61 = vlog2.f32 %v36_v2 }
   0x5   :  { %63 = vlog2.f32 %v37_v3 }
  0x11   :  { %v62_v4 = vpop.eup %61 }
  0x12   :  { %v64_v5 = vpop.eup %63  ;;  %v39_v6 = vmul.f32 0.6931472, %v62_v4 }
  0x13   :  { %v41_v7 = vmul.f32 0.6931472, %v64_v5 }
  0x14   :  { %v42_v8 = vand.u32 2147483647, %v39_v6 }
  0x15   :  { %v43_v9 = vand.u32 2147483647, %v41_v7 }
  0x16   :  { %v46_v10 = vmax.f32 %v42_v8, 0.0 }
  0x17   :  { %v47_v11 = vmax.f32 %v43_v9, 0.0 }
  0x18   :  { %48 = vst [vmem:[%s88_s1] sm:$0xff] %v46_v10 }
  0x19   :  { %49 = vst [vmem:[%s88_s1 + $0x8] sm:$0xff] %v47_v11 }

</bundles_post_ra>
